<compile_context>
chip_gen: v6e
topology: v6e:2x2x1
jax: 0.10.0
libtpu: 0.0.40
codegen_flags: <defaults>
</compile_context>

<pallas_src>
import functools

import jax
import jax.numpy as jnp
from jax.experimental import pallas as pl
from jax.experimental.pallas import tpu as pltpu


def _round_up(x: int, m: int) -> int:
    return (x + m - 1) // m * m


def _neigh_project(a, feats, w, inv_deg):
    """((A @ feats) / deg) @ w with the per-row 1/deg scale applied on the narrower side.

    a     : (tile_n, n_pad) bf16  0/1 adjacency row block
    feats : (n_pad, F)      bf16
    w     : (F, O)          bf16
    inv_deg: (tile_n, 1)    f32
    All matmuls are bf16 operands with f32 accumulation.
    """
    s = jnp.dot(a, feats, preferred_element_type=jnp.float32)      # (tile_n, F) f32
    f_in = s.shape[1]
    f_out = w.shape[1]
    if f_in <= f_out:
        s = (s * inv_deg).astype(jnp.bfloat16)                     # scale the narrow side
        return jnp.dot(s, w, preferred_element_type=jnp.float32)
    out = jnp.dot(s.astype(jnp.bfloat16), w, preferred_element_type=jnp.float32)
    return out * inv_deg                                           # (tile_n, O) narrower


def _fused_graphsage_kernel(adj_ref, x_ref, ws1_ref, wn1_ref, b1_ref,
                            ws2_ref, wn2_ref, b2_ref, o_ref, h_ref,
                            *, tile_n: int):
    """Fused 2-layer GraphSAGE forward.

    adj_ref : (tile_n, n_pad) bf16   row block of the 0/1 adjacency (pipelined)
    x_ref   : (n_pad, fi_pad) bf16   full input features (resident VMEM, loaded once)
    ws*/wn* : bf16 padded weights; b*: (1, f_out_pad) f32 (resident VMEM)
    o_ref   : (tile_n, hf_pad) f32   output row block (written only in phase 1)
    h_ref   : (n_pad, hf_pad) bf16   VMEM scratch holding the full layer-1 output
    """
    phase = pl.program_id(0)
    tile = pl.program_id(1)
    row0 = pl.multiple_of(tile * tile_n, tile_n)

    a = adj_ref[...]                                             # (tile_n, n_pad) bf16
    # In-kernel degree: XLU row reduce with f32 accumulation (no explicit f32 copy of a),
    # EUP approx reciprocal (idle slot; use approx=False if strict f32 parity is needed).
    deg = jnp.sum(a, axis=1, keepdims=True, dtype=jnp.float32)
    inv_deg = pl.reciprocal(jnp.maximum(deg, 1.0), approx=True)

    @pl.when(phase == 0)
    def _layer1():
        x_full = x_ref[...]                                      # bf16 resident
        x_tile = x_ref[pl.ds(row0, tile_n), :]                   # bf16
        h = jnp.dot(x_tile, ws1_ref[...], preferred_element_type=jnp.float32)
        h = h + _neigh_project(a, x_full, wn1_ref[...], inv_deg)
        h = jnp.maximum(h + b1_ref[...], 0.0)                    # fused ReLU
        h_ref[pl.ds(row0, tile_n), :] = h.astype(jnp.bfloat16)   # bf16 scratch write

    @pl.when(phase == 1)
    def _layer2():
        h_full = h_ref[...]                                      # bf16, no recast
        h_tile = h_ref[pl.ds(row0, tile_n), :]
        out = jnp.dot(h_tile, ws2_ref[...], preferred_element_type=jnp.float32)
        out = out + _neigh_project(a, h_full, wn2_ref[...], inv_deg)
        o_ref[...] = out + b2_ref[...]


def _vmem_limit_bytes(tile_n, n_pad, fi_pad, hf_pad):
    """Budget = pipelined blocks + resident operands + h1 scratch, capped per generation."""
    need = (
        2 * tile_n * n_pad * 2        # adjacency row block, bf16, double-buffered
        + 2 * tile_n * hf_pad * 4     # output block, f32, double-buffered
        + n_pad * fi_pad * 2          # resident x (bf16, single copy)
        + 2 * fi_pad * hf_pad * 2     # W_self1 / W_neigh1 (bf16)
        + 2 * hf_pad * hf_pad * 2     # W_self2 / W_neigh2 (bf16)
        + 2 * 8 * hf_pad * 4          # biases (f32, sublane-padded)
        + n_pad * hf_pad * 2          # layer-1 scratch (bf16)
    )
    try:
        cap = getattr(pltpu.get_tpu_info(), "vmem_capacity_bytes", None)
    except Exception:
        cap = None
    if not cap:
        cap = 64 * 1024 * 1024        # conservative default (v7x per-TC VMEM)
    # 1.5x headroom for compiler temporaries; never request more than ~85% of physical.
    return int(min(max(int(need * 1.5), 16 * 1024 * 1024), int(cap * 0.85)))


def graphsage_forward(adj, x, params, *, tile_n=256):
    """h = conv2(g, relu(conv1(g, x))) - single fused pallas_call.

    tile_n: row-tile size; sweep up to 512 (1024 for small N) on v5e/v6e (128 MiB VMEM),
    keep 256 on v7x unless the computed budget shows slack.
    """
    n = adj.shape[0]
    in_feats = x.shape[1]
    h_feats = params["w_self1"].shape[1]

    tile_n = min(tile_n, _round_up(n, 128))      # multiple of 128 (lane-dense adj tiles)
    n_pad = _round_up(n, tile_n)
    fi_pad = _round_up(in_feats, 128)
    hf_pad = _round_up(h_feats, 128)
    num_tiles = n_pad // tile_n

    def pad2(a, r, c, dtype):
        a = a.astype(dtype)
        return jnp.pad(a, ((0, r - a.shape[0]), (0, c - a.shape[1])))

    adj_p = pad2(adj, n_pad, n_pad, jnp.bfloat16)        # 0/1 exact in bf16
    x_p = pad2(x, n_pad, fi_pad, jnp.bfloat16)
    ws1 = pad2(params["w_self1"], fi_pad, hf_pad, jnp.bfloat16)
    wn1 = pad2(params["w_neigh1"], fi_pad, hf_pad, jnp.bfloat16)
    b1 = pad2(params["b1"].reshape(1, -1), 1, hf_pad, jnp.float32)
    ws2 = pad2(params["w_self2"], hf_pad, hf_pad, jnp.bfloat16)
    wn2 = pad2(params["w_neigh2"], hf_pad, hf_pad, jnp.bfloat16)
    b2 = pad2(params["b2"].reshape(1, -1), 1, hf_pad, jnp.float32)

    kernel = functools.partial(_fused_graphsage_kernel, tile_n=tile_n)
    # Resident operands: loaded into VMEM once before the grid, single buffer (no
    # per-step double-buffering) - the Buffered(1) intent from the perf review.
    resident = pl.BlockSpec(memory_space=pltpu.MemorySpace.VMEM)

    out_p = pl.pallas_call(
        kernel,
        out_shape=jax.ShapeDtypeStruct((n_pad, hf_pad), jnp.float32),
        grid=(2, num_tiles),                     # (phase, row_tile); phase outer/sequential
        in_specs=[
            pl.BlockSpec((tile_n, n_pad), lambda p, t: (t, 0)),   # adjacency row block
            resident,                                             # x (full, loaded once)
            resident,                                             # W_self1
            resident,                                             # W_neigh1
            resident,                                             # b1
            resident,                                             # W_self2
            resident,                                             # W_neigh2
            resident,                                             # b2
        ],
        # Constant block (0) during phase 0 -> no HBM flushes of untouched/garbage data;
        # each output row tile is written back exactly once, after phase 1 fills it.
        out_specs=pl.BlockSpec((tile_n, hf_pad), lambda p, t: (p * t, 0)),
        scratch_shapes=[pltpu.VMEM((n_pad, hf_pad), jnp.bfloat16)],  # full layer-1 output
        compiler_params=pltpu.CompilerParams(
            # Tile axis must stay "arbitrary": the shared h1 scratch has to be visible to
            # every row tile, so it cannot be sharded across TensorCores.
            dimension_semantics=("arbitrary", "arbitrary"),
            vmem_limit_bytes=_vmem_limit_bytes(tile_n, n_pad, fi_pad, hf_pad),
        ),
    )(adj_p, x_p, ws1, wn1, b1, ws2, wn2, b2)

    return out_p[:n, :h_feats]


def init_params(key, in_feats, h_feats):
    ks = jax.random.split(key, 4)
    scale1 = 1.0 / jnp.sqrt(in_feats)
    scale2 = 1.0 / jnp.sqrt(h_feats)
    return {
        "w_self1":  scale1 * jax.random.normal(ks[0], (in_feats, h_feats), jnp.float32),
        "w_neigh1": scale1 * jax.random.normal(ks[1], (in_feats, h_feats), jnp.float32),
        "b1":       jnp.zeros((1, h_feats), jnp.float32),
        "w_self2":  scale2 * jax.random.normal(ks[2], (h_feats, h_feats), jnp.float32),
        "w_neigh2": scale2 * jax.random.normal(ks[3], (h_feats, h_feats), jnp.float32),
        "b2":       jnp.zeros((1, h_feats), jnp.float32),
    }


def _reference_forward(adj, x, params):
    """Pure-JAX f32 reference of the same 2-layer mean-aggregator GraphSAGE."""
    deg = jnp.maximum(adj.sum(axis=1, keepdims=True), 1.0)

    def conv(feat, ws, wn, b):
        neigh = (adj @ feat) / deg
        return feat @ ws + neigh @ wn + b

    h = jax.nn.relu(conv(x, params["w_self1"], params["w_neigh1"], params["b1"]))
    return conv(h, params["w_self2"], params["w_neigh2"], params["b2"])


if __name__ == "__main__":
    key = jax.random.PRNGKey(0)
    k_adj, k_x, k_p = jax.random.split(key, 3)

    num_nodes = 16
    in_feats = 8
    h_feats = 32

    # deterministic random directed graph (no self loops)
    adj = (jax.random.uniform(k_adj, (num_nodes, num_nodes)) < 0.3).astype(jnp.float32)
    adj = adj * (1.0 - jnp.eye(num_nodes, dtype=jnp.float32))

    x = jax.random.normal(k_x, (num_nodes, in_feats), jnp.float32)
    params = init_params(k_p, in_feats, h_feats)

    out = graphsage_forward(adj, x, params)
    out = jax.block_until_ready(out)

    assert out.shape == (num_nodes, h_feats)
    assert jnp.all(jnp.isfinite(out))

    # Tolerance check vs f32 reference (bf16 operands + approx 1/deg => ~1% aggregate).
    ref = _reference_forward(adj, x, params)
    rel_err = jnp.linalg.norm(out - ref) / (jnp.linalg.norm(ref) + 1e-6)
    assert rel_err < 2e-2, f"relative error too large: {rel_err}"

    print("KERNEL_OK")
</pallas_src>

<mosaic_0001>
module attributes {stable_mosaic.version = 11 : i64} {
  func.func @_fused_graphsage_kernel(%arg0: i32, %arg1: i32, %arg2: memref<128x128xbf16, #tpu.memory_space<vmem>>, %arg3: memref<128x128xbf16, #tpu.memory_space<vmem>>, %arg4: memref<128x128xbf16, #tpu.memory_space<vmem>>, %arg5: memref<128x128xbf16, #tpu.memory_space<vmem>>, %arg6: memref<1x128xf32, #tpu.memory_space<vmem>>, %arg7: memref<128x128xbf16, #tpu.memory_space<vmem>>, %arg8: memref<128x128xbf16, #tpu.memory_space<vmem>>, %arg9: memref<1x128xf32, #tpu.memory_space<vmem>>, %arg10: memref<128x128xf32, #tpu.memory_space<vmem>>, %arg11: memref<128x128xbf16, #tpu.memory_space<vmem>>) attributes {dimension_semantics = [#tpu.dimension_semantics<arbitrary>, #tpu.dimension_semantics<arbitrary>], iteration_bounds = array<i64: 2, 1>, scalar_prefetch = 0 : i64, scratch_operands = 1 : i64, tpu.core_type = #tpu.core_type<tc>, window_params = [{transform_indices = @transform_0, window_bounds = array<i64: 128, 128>}, {pipeline_mode = #tpu.pipeline_mode<synchronous>, transform_indices = @transform_1, window_bounds = array<i64: 128, 128>}, {pipeline_mode = #tpu.pipeline_mode<synchronous>, transform_indices = @transform_2, window_bounds = array<i64: 128, 128>}, {pipeline_mode = #tpu.pipeline_mode<synchronous>, transform_indices = @transform_3, window_bounds = array<i64: 128, 128>}, {pipeline_mode = #tpu.pipeline_mode<synchronous>, transform_indices = @transform_4, window_bounds = array<i64: 1, 128>}, {pipeline_mode = #tpu.pipeline_mode<synchronous>, transform_indices = @transform_5, window_bounds = array<i64: 128, 128>}, {pipeline_mode = #tpu.pipeline_mode<synchronous>, transform_indices = @transform_6, window_bounds = array<i64: 128, 128>}, {pipeline_mode = #tpu.pipeline_mode<synchronous>, transform_indices = @transform_7, window_bounds = array<i64: 1, 128>}, {transform_indices = @transform_8, window_bounds = array<i64: 128, 128>}]} {
    %c128_i32 = arith.constant 128 : i32
    %0 = arith.muli %arg1, %c128_i32 : i32
    %1 = tpu.assume_multiple %0, 128 : i32
    %c0 = arith.constant 0 : index
    %c0_0 = arith.constant 0 : index
    %2 = vector.load %arg2[%c0, %c0_0] : memref<128x128xbf16, #tpu.memory_space<vmem>>, vector<128x128xbf16>
    %3 = arith.extf %2 : vector<128x128xbf16> to vector<128x128xf32>
    %cst = arith.constant dense<0.000000e+00> : vector<128xf32>
    %4 = vector.multi_reduction <add>, %3, %cst [1] : vector<128x128xf32> to vector<128xf32>
    %5 = vector.shape_cast %4 : vector<128xf32> to vector<128x1xf32>
    %cst_1 = arith.constant 1.000000e+00 : f32
    %6 = vector.broadcast %cst_1 : f32 to vector<128x1xf32>
    %7 = arith.maximumf %5, %6 : vector<128x1xf32>
    %8 = tpu.reciprocal %7 {approx = true} : vector<128x1xf32> -> vector<128x1xf32>
    %c0_i32 = arith.constant 0 : i32
    %9 = arith.cmpi eq, %arg0, %c0_i32 : i32
    %10 = arith.extui %9 : i1 to i32
    %c0_i32_2 = arith.constant 0 : i32
    %11 = arith.cmpi ne, %10, %c0_i32_2 : i32
    scf.if %11 {
      %c0_4 = arith.constant 0 : index
      %c0_5 = arith.constant 0 : index
      %15 = vector.load %arg3[%c0_4, %c0_5] : memref<128x128xbf16, #tpu.memory_space<vmem>>, vector<128x128xbf16>
      %16 = arith.index_cast %1 : i32 to index
      %c0_6 = arith.constant 0 : index
      %17 = vector.load %arg3[%16, %c0_6] : memref<128x128xbf16, #tpu.memory_space<vmem>>, vector<128x128xbf16>
      %c0_7 = arith.constant 0 : index
      %c0_8 = arith.constant 0 : index
      %18 = vector.load %arg4[%c0_7, %c0_8] : memref<128x128xbf16, #tpu.memory_space<vmem>>, vector<128x128xbf16>
      %cst_9 = arith.constant dense<0.000000e+00> : vector<128x128xf32>
      %19 = tpu.matmul %17, %18, %cst_9 {dimension_numbers = #tpu.dot_dimension_numbers<[1], [0], [0], [1], [0, 0, 1, 1], [], []>} : vector<128x128xbf16>, vector<128x128xbf16>, vector<128x128xf32> -> vector<128x128xf32>
      %c0_10 = arith.constant 0 : index
      %c0_11 = arith.constant 0 : index
      %20 = vector.load %arg5[%c0_10, %c0_11] : memref<128x128xbf16, #tpu.memory_space<vmem>>, vector<128x128xbf16>
      %cst_12 = arith.constant dense<0.000000e+00> : vector<128x128xf32>
      %21 = tpu.matmul %2, %15, %cst_12 {dimension_numbers = #tpu.dot_dimension_numbers<[1], [0], [0], [1], [0, 0, 1, 1], [], []>} : vector<128x128xbf16>, vector<128x128xbf16>, vector<128x128xf32> -> vector<128x128xf32>
      %22 = vector.broadcast %8 : vector<128x1xf32> to vector<128x128xf32>
      %23 = arith.mulf %21, %22 : vector<128x128xf32>
      %24 = arith.truncf %23 : vector<128x128xf32> to vector<128x128xbf16>
      %cst_13 = arith.constant dense<0.000000e+00> : vector<128x128xf32>
      %25 = tpu.matmul %24, %20, %cst_13 {dimension_numbers = #tpu.dot_dimension_numbers<[1], [0], [0], [1], [0, 0, 1, 1], [], []>} : vector<128x128xbf16>, vector<128x128xbf16>, vector<128x128xf32> -> vector<128x128xf32>
      %26 = arith.addf %19, %25 : vector<128x128xf32>
      %c0_14 = arith.constant 0 : index
      %c0_15 = arith.constant 0 : index
      %27 = vector.load %arg6[%c0_14, %c0_15] : memref<1x128xf32, #tpu.memory_space<vmem>>, vector<1x128xf32>
      %28 = vector.broadcast %27 : vector<1x128xf32> to vector<128x128xf32>
      %29 = arith.addf %26, %28 : vector<128x128xf32>
      %cst_16 = arith.constant 0.000000e+00 : f32
      %30 = vector.broadcast %cst_16 : f32 to vector<128x128xf32>
      %31 = arith.maximumf %29, %30 : vector<128x128xf32>
      %32 = arith.truncf %31 : vector<128x128xf32> to vector<128x128xbf16>
      %33 = arith.index_cast %1 : i32 to index
      %c0_17 = arith.constant 0 : index
      %34 = vector.load %arg11[%33, %c0_17] : memref<128x128xbf16, #tpu.memory_space<vmem>>, vector<128x128xbf16>
      tpu.vector_store %arg11[%33, %c0_17], %32 {strides = array<i32>} : memref<128x128xbf16, #tpu.memory_space<vmem>>, vector<128x128xbf16>,
    } else {
    }
    %c1_i32 = arith.constant 1 : i32
    %12 = arith.cmpi eq, %arg0, %c1_i32 : i32
    %13 = arith.extui %12 : i1 to i32
    %c0_i32_3 = arith.constant 0 : i32
    %14 = arith.cmpi ne, %13, %c0_i32_3 : i32
    scf.if %14 {
      %c0_4 = arith.constant 0 : index
      %c0_5 = arith.constant 0 : index
      %15 = vector.load %arg11[%c0_4, %c0_5] : memref<128x128xbf16, #tpu.memory_space<vmem>>, vector<128x128xbf16>
      %16 = arith.index_cast %1 : i32 to index
      %c0_6 = arith.constant 0 : index
      %17 = vector.load %arg11[%16, %c0_6] : memref<128x128xbf16, #tpu.memory_space<vmem>>, vector<128x128xbf16>
      %c0_7 = arith.constant 0 : index
      %c0_8 = arith.constant 0 : index
      %18 = vector.load %arg7[%c0_7, %c0_8] : memref<128x128xbf16, #tpu.memory_space<vmem>>, vector<128x128xbf16>
      %cst_9 = arith.constant dense<0.000000e+00> : vector<128x128xf32>
      %19 = tpu.matmul %17, %18, %cst_9 {dimension_numbers = #tpu.dot_dimension_numbers<[1], [0], [0], [1], [0, 0, 1, 1], [], []>} : vector<128x128xbf16>, vector<128x128xbf16>, vector<128x128xf32> -> vector<128x128xf32>
      %c0_10 = arith.constant 0 : index
      %c0_11 = arith.constant 0 : index
      %20 = vector.load %arg8[%c0_10, %c0_11] : memref<128x128xbf16, #tpu.memory_space<vmem>>, vector<128x128xbf16>
      %cst_12 = arith.constant dense<0.000000e+00> : vector<128x128xf32>
      %21 = tpu.matmul %2, %15, %cst_12 {dimension_numbers = #tpu.dot_dimension_numbers<[1], [0], [0], [1], [0, 0, 1, 1], [], []>} : vector<128x128xbf16>, vector<128x128xbf16>, vector<128x128xf32> -> vector<128x128xf32>
      %22 = vector.broadcast %8 : vector<128x1xf32> to vector<128x128xf32>
      %23 = arith.mulf %21, %22 : vector<128x128xf32>
      %24 = arith.truncf %23 : vector<128x128xf32> to vector<128x128xbf16>
      %cst_13 = arith.constant dense<0.000000e+00> : vector<128x128xf32>
      %25 = tpu.matmul %24, %20, %cst_13 {dimension_numbers = #tpu.dot_dimension_numbers<[1], [0], [0], [1], [0, 0, 1, 1], [], []>} : vector<128x128xbf16>, vector<128x128xbf16>, vector<128x128xf32> -> vector<128x128xf32>
      %26 = arith.addf %19, %25 : vector<128x128xf32>
      %c0_14 = arith.constant 0 : index
      %c0_15 = arith.constant 0 : index
      %27 = vector.load %arg9[%c0_14, %c0_15] : memref<1x128xf32, #tpu.memory_space<vmem>>, vector<1x128xf32>
      %28 = vector.broadcast %27 : vector<1x128xf32> to vector<128x128xf32>
      %29 = arith.addf %26, %28 : vector<128x128xf32>
      %c0_16 = arith.constant 0 : index
      %c0_17 = arith.constant 0 : index
      %30 = vector.load %arg10[%c0_16, %c0_17] : memref<128x128xf32, #tpu.memory_space<vmem>>, vector<128x128xf32>
      tpu.vector_store %arg10[%c0_16, %c0_17], %29 {strides = array<i32>} : memref<128x128xf32, #tpu.memory_space<vmem>>, vector<128x128xf32>,
    } else {
    }
    return
  }
  func.func @transform_0(%arg0: i32, %arg1: i32) -> (i32, i32) {
    %c0_i32 = arith.constant 0 : i32
    %c0_i32_0 = arith.constant 0 : i32
    return %arg1, %c0_i32 : i32, i32
  }
  func.func @transform_1(%arg0: i32, %arg1: i32) -> (i32, i32) {
    %c0_i32 = arith.constant 0 : i32
    %c0_i32_0 = arith.constant 0 : i32
    %c0_i32_1 = arith.constant 0 : i32
    return %c0_i32, %c0_i32_0 : i32, i32
  }
  func.func @transform_2(%arg0: i32, %arg1: i32) -> (i32, i32) {
    %c0_i32 = arith.constant 0 : i32
    %c0_i32_0 = arith.constant 0 : i32
    %c0_i32_1 = arith.constant 0 : i32
    return %c0_i32, %c0_i32_0 : i32, i32
  }
  func.func @transform_3(%arg0: i32, %arg1: i32) -> (i32, i32) {
    %c0_i32 = arith.constant 0 : i32
    %c0_i32_0 = arith.constant 0 : i32
    %c0_i32_1 = arith.constant 0 : i32
    return %c0_i32, %c0_i32_0 : i32, i32
  }
  func.func @transform_4(%arg0: i32, %arg1: i32) -> (i32, i32) {
    %c0_i32 = arith.constant 0 : i32
    %c0_i32_0 = arith.constant 0 : i32
    %c0_i32_1 = arith.constant 0 : i32
    return %c0_i32, %c0_i32_0 : i32, i32
  }
  func.func @transform_5(%arg0: i32, %arg1: i32) -> (i32, i32) {
    %c0_i32 = arith.constant 0 : i32
    %c0_i32_0 = arith.constant 0 : i32
    %c0_i32_1 = arith.constant 0 : i32
    return %c0_i32, %c0_i32_0 : i32, i32
  }
  func.func @transform_6(%arg0: i32, %arg1: i32) -> (i32, i32) {
    %c0_i32 = arith.constant 0 : i32
    %c0_i32_0 = arith.constant 0 : i32
    %c0_i32_1 = arith.constant 0 : i32
    return %c0_i32, %c0_i32_0 : i32, i32
  }
  func.func @transform_7(%arg0: i32, %arg1: i32) -> (i32, i32) {
    %c0_i32 = arith.constant 0 : i32
    %c0_i32_0 = arith.constant 0 : i32
    %c0_i32_1 = arith.constant 0 : i32
    return %c0_i32, %c0_i32_0 : i32, i32
  }
  func.func @transform_8(%arg0: i32, %arg1: i32) -> (i32, i32) {
    %0 = arith.muli %arg0, %arg1 : i32
    %c0_i32 = arith.constant 0 : i32
    %c0_i32_0 = arith.constant 0 : i32
    return %0, %c0_i32 : i32, i32
  }
}

</mosaic_0001>

<bundles_post_ra>
// kernel: tpu_custom_call.1
= control target key start
LH: loop header
LB: loop body
LE: loop exit
PB: predicated region body
PF: predicated region fallthrough
CT: control target
= control target key end

     0   :  { %13 = vsyncpa [#allocation4], 0  ;;  %s3463_s0 = inlined_call_operand.hbm [shape: bf16[128,128], index: 0, kind: input, shape index: {}]   ;;  %s3464_s1 = inlined_call_operand.hbm [shape: bf16[128,128], index: 1, kind: input, shape index: {}]   ;;  %s3465_s2 = inlined_call_operand.hbm [shape: bf16[128,128], index: 2, kind: input, shape index: {}]   ;;  %s3466_s3 = inlined_call_operand.hbm [shape: bf16[128,128], index: 3, kind: input, shape index: {}]   ;;  %s3467_s4 = inlined_call_operand.vmem [shape: f32[1,128], index: 4, kind: input, shape index: {}]   ;;  %s3468_s5 = inlined_call_operand.hbm [shape: bf16[128,128], index: 5, kind: input, shape index: {}]   ;;  %s3469_s6 = inlined_call_operand.hbm [shape: bf16[128,128], index: 6, kind: input, shape index: {}]   ;;  %s3470_s7 = inlined_call_operand.vmem [shape: f32[1,128], index: 7, kind: input, shape index: {}]   ;;  %s3471_s8 = inlined_call_operand.hbm [shape: f32[128,128], index: 8, kind: output, shape index: {}]  }
   0x1   :  { %14 = vsyncpa [#allocation7], 0 }
   0x2   :  { %15 = vsyncpa [#allocation10], 0 }
   0x3   :  { %16 = vsyncpa [#allocation13], 0 }
   0x4   :  { %17 = vsyncpa [#allocation5], 0 }
   0x5   :  { %19 = vsyncpa [#allocation5 + $0x1], 0  ;;  %s3030_s27 = smov 0   ;;  %s3032_s28 = smov 0  }
   0x6   :  { %s3034_s29 = smov 0  }
   0x7 LB: > { %s2050_s30 = sadd.s32 4294967295, %s2972_s29   ;;  %s2051_s9 = sadd.s32 4294967294, %s2972_s29   ;;  %s2972_s29 = sphi %s3034_s29, %s25_s29   ;;  %s2968_s28 = sphi %s3032_s28, %s3478_s28   ;;  %s2964_s27 = sphi %s3030_s27, %s3477_s27  }
   0x8   : > { %p2052_p0 = scmp.ge.s32.totalorder %s2972_s29, 1  ;;  %p243_p1 = scmp.lt.s32.totalorder %s2972_s29, 3 }
   0x9   : > { %p3051_p2 = scmp.eq.s32.totalorder %s2050_s30, 0  ;;  %s2974_s12 = smov [#allocation6]  }
   0xa   : > { %p3055_p3 = pnand %p2052_p0, %p243_p1  ;;  %s271_s13 = sshll.u32 %s2974_s12, 4  ;;  %s272_s13 = int_to_ptr.vmem [resolvable:$true] %s271_s13 }
   0xb   : > { %s2975_s14 = smov [#allocation9]   ;;  %s2761_s18 = scalar_lea.vmem %s272_s13, 1024 }
   0xc   : > { %p2581_p4 = pneg %p3055_p3  ;;  %s297_s15 = sshll.u32 %s2975_s14, 4  ;;  %s298_s15 = int_to_ptr.vmem [resolvable:$true] %s297_s15 }
   0xd   : > { %p2762_p7 = scmp.ne.s32.totalorder %s272_s13, %s2761_s18  ;;  %p2769_p10 = scmp.lt.s32.totalorder %s272_s13, %s272_s13 }
   0xe   : > { %p3063_p5 = pnand %p3051_p2, %p2581_p4  ;;  %p2770_p11 = scmp.lt.s32.totalorder %s2761_s18, %s2761_s18 }
  0x10   : > { %p3069_p6 = pneg %p3063_p5  ;;  %p2771_p12 = por %p2770_p11, %p2769_p10 }
  0x12   : > { %p2764_p8 = pnand %p2762_p7, %p3069_p6 }
  0x14   : > { %p2765_p9 = pneg %p2764_p8 }
  0x16   : > { %p2772_p13 = pnand %p2771_p12, %p2765_p9 }
  0x18   : > { %2775 = shalt.err (!%p2772_p13)
}
  0x19   : > { %s2976_s19 = smov 64   ;;  %s2977_s20 = smov 4  }
  0x1a   : > { %2587 = dma.hbm_to_vmem [thread:$0]  (!%p3063_p5), %s3464_s1, 1024, %s272_s13, [#allocation7], %s2976_s19, %s2976_s19, %s2977_s20  }
  0x1b   : > { %s2787_s23 = scalar_lea.vmem %s298_s15, 1024  ;;  %p2795_p7 = scmp.lt.s32.totalorder %s298_s15, %s298_s15 }
  0x1c   : > { %p2788_p0 = scmp.ne.s32.totalorder %s298_s15, %s2787_s23  ;;  %p2796_p8 = scmp.lt.s32.totalorder %s2787_s23, %s2787_s23 }
  0x1e   : > { %p2790_p1 = pnand %p2788_p0, %p3069_p6  ;;  %p2797_p9 = por %p2796_p8, %p2795_p7 }
  0x20   : > { %p2791_p4 = pneg %p2790_p1 }
  0x22   : > { %p2798_p10 = pnand %p2797_p9, %p2791_p4 }
  0x24   : > { %2801 = shalt.err (!%p2798_p10)
}
  0x25   : > { %2593 = dma.hbm_to_vmem [thread:$0]  (!%p3063_p5), %s3466_s3, 1024, %s298_s15, [#allocation10], %s2976_s19, %s2976_s19, %s2977_s20  }
  0x26   : > { %s37_s26 = sadd.s32 1, %s2968_s28  ;;  %s2978_s12 = smov [#allocation3]  }
  0x27   : > { %p39_p11 = scmp.ge.s32.totalorder %s37_s26, 2  ;;  %s258_s13 = sshll.u32 %s2978_s12, 4  ;;  %s259_s13 = int_to_ptr.vmem [resolvable:$true] %s258_s13 }
  0x28   : > { %s2813_s14 = scalar_lea.vmem %s259_s13, 1024  ;;  %p2821_p1 = scmp.lt.s32.totalorder %s259_s13, %s259_s13 }
  0x29   : > { %s3480_s26 = smov (%p39_p11, %s37_s26), 0  ;;  %p2814_p12 = scmp.ne.s32.totalorder %s259_s13, %s2813_s14 }
  0x2a   : > { %p2822_p4 = scmp.lt.s32.totalorder %s2813_s14, %s2813_s14 }
  0x2b   : > { %p2816_p13 = pnand %p2814_p12, %p3069_p6 }
  0x2c   : > { %p2823_p7 = por %p2822_p4, %p2821_p1 }
  0x2d   : > { %p2817_p0 = pneg %p2816_p13 }
  0x2f   : > { %p2824_p8 = pnand %p2823_p7, %p2817_p0 }
  0x31   : > { %2827 = shalt.err (!%p2824_p8)
}
  0x32   : > { %2584 = dma.hbm_to_vmem [thread:$0]  (!%p3063_p5), %s3463_s0, 1024, %s259_s13, [#allocation4], %s2976_s19, %s2976_s19, %s2977_s20  }
  0x33   : > { %s2979_s21 = smov [#allocation8]   ;;  %s2980_s23 = smov [#allocation11]  }
  0x34   : > { %s284_s22 = sshll.u32 %s2979_s21, 4  ;;  %s313_s24 = sshll.u32 %s2980_s23, 4  ;;  %s285_s22 = int_to_ptr.vmem [resolvable:$true] %s284_s22  ;;  %s314_s24 = int_to_ptr.vmem [resolvable:$true] %s313_s24 }
  0x35   : > { %s2839_s25 = scalar_lea.vmem %s285_s22, 1024  ;;  %p2847_p12 = scmp.lt.s32.totalorder %s285_s22, %s285_s22 }
  0x36   : > { %p2840_p9 = scmp.ne.s32.totalorder %s285_s22, %s2839_s25  ;;  %p2848_p13 = scmp.lt.s32.totalorder %s2839_s25, %s2839_s25 }
  0x38   : > { %p2842_p10 = pnand %p2840_p9, %p3069_p6  ;;  %p2849_p0 = por %p2848_p13, %p2847_p12 }
  0x3a   : > { %p2843_p11 = pneg %p2842_p10 }
  0x3c   : > { %p2850_p1 = pnand %p2849_p0, %p2843_p11 }
  0x3e   : > { %2853 = shalt.err (!%p2850_p1)
}
  0x3f   : > { %2590 = dma.hbm_to_vmem [thread:$0]  (!%p3063_p5), %s3465_s2, 1024, %s285_s22, [#allocation7], %s2976_s19, %s2976_s19, %s2977_s20  }
  0x40   : > { %s2865_s14 = scalar_lea.vmem %s314_s24, 1024  ;;  %p2873_p9 = scmp.lt.s32.totalorder %s314_s24, %s314_s24 }
  0x41   : > { %p2866_p4 = scmp.ne.s32.totalorder %s314_s24, %s2865_s14  ;;  %p2874_p10 = scmp.lt.s32.totalorder %s2865_s14, %s2865_s14 }
  0x43   : > { %p2868_p7 = pnand %p2866_p4, %p3069_p6  ;;  %p2875_p11 = por %p2874_p10, %p2873_p9 }
  0x45   : > { %p2869_p8 = pneg %p2868_p7 }
  0x47   : > { %p2876_p12 = pnand %p2875_p11, %p2869_p8 }
  0x49   : > { %2879 = shalt.err (!%p2876_p12)
}
  0x4a   : > { %2596 = dma.hbm_to_vmem [thread:$0]  (!%p3063_p5), %s3468_s5, 1024, %s314_s24, [#allocation10], %s2976_s19, %s2976_s19, %s2977_s20  }
  0x4b   : > { %s2981_s21 = smov [#allocation12]  }
  0x4c   : > { %s326_s22 = sshll.u32 %s2981_s21, 4  ;;  %s327_s22 = int_to_ptr.vmem [resolvable:$true] %s326_s22 }
  0x4d   : > { %s2891_s23 = scalar_lea.vmem %s327_s22, 1024  ;;  %p2899_p4 = scmp.lt.s32.totalorder %s327_s22, %s327_s22 }
  0x4e   : > { %p2892_p13 = scmp.ne.s32.totalorder %s327_s22, %s2891_s23  ;;  %p2900_p7 = scmp.lt.s32.totalorder %s2891_s23, %s2891_s23 }
  0x50   : > { %p2894_p0 = pnand %p2892_p13, %p3069_p6  ;;  %p2901_p8 = por %p2900_p7, %p2899_p4 }
  0x52   : > { %p2895_p1 = pneg %p2894_p0 }
  0x54   : > { %p2902_p9 = pnand %p2901_p8, %p2895_p1 }
  0x56   : > { %2905 = shalt.err (!%p2902_p9)
}
  0x57   : > { %2599 = dma.hbm_to_vmem [thread:$0]  (!%p3063_p5), %s3469_s6, 1024, %s327_s22, [#allocation13], %s2976_s19, %s2976_s19, %s2977_s20  }
  0x58   : > { %345 = sbr.rel (%p3055_p3) target bundleno = 1273 (0x4f9), region = 52 }
  0x5d   : > { %2943 = dma.done.wait (%p3051_p2), [#allocation4], 1024  }
  0x5e   : > { %2945 = vsyncadd (%p3051_p2), [#allocation4], 4294966272 }
  0x5f   : > { %2947 = dma.done.wait (%p3051_p2), [#allocation7], 2048  }
  0x60   : > { %2949 = vsyncadd (%p3051_p2), [#allocation7], 4294965248 }
  0x61   : > { %2951 = dma.done.wait (%p3051_p2), [#allocation10], 2048  }
  0x62   : > { %2953 = vsyncadd (%p3051_p2), [#allocation10], 4294965248 }
  0x63   : > { %2955 = dma.done.wait (%p3051_p2), [#allocation13], 1024  }
  0x64   : > { %2957 = vsyncadd (%p3051_p2), [#allocation13], 4294966272  ;;  %v3154_v0 = vld [vmem:[#allocation3 + $0x8] sm:$0xf]  ;;  %v3156_v1 = vld [vmem:[#allocation3] sm:$0xf] }
  0x65   : > { %v3158_v2 = vld [vmem:[#allocation3 + $0xc] sm:$0xf]  ;;  %v417_v3 = vunpack.c.l.bf16 %v3154_v0  ;;  %v415_v4 = vunpack.c.l.bf16 %v3156_v1  ;;  %v3162_v5 = vld [vmem:[#allocation3 + $0x4] sm:$0xf]  ;;  %v3166_v8 = vld [vmem:[#allocation3 + $0x14] sm:$0xf] }
  0x66   : > { %v418_v6 = vunpack.c.l.bf16 %v3158_v2  ;;  %v416_v7 = vunpack.c.l.bf16 %v3162_v5  ;;  %v3168_v9 = vld [vmem:[#allocation3 + $0x10] sm:$0xf]  ;;  %v420_v10 = vunpack.c.l.bf16 %v3166_v8  ;;  %v3172_v12 = vld [vmem:[#allocation3 + $0x1c] sm:$0xf]  ;;  %v3174_v13 = vld [vmem:[#allocation3 + $0x18] sm:$0xf] }
  0x67   : > { %435 = vadd.xlane.f32.xlu1 %v417_v3  ;;  %431 = vadd.xlane.f32.xlu0 %v415_v4  ;;  %v419_v11 = vunpack.c.l.bf16 %v3168_v9  ;;  %v422_v14 = vunpack.c.l.bf16 %v3172_v12  ;;  %v421_v15 = vunpack.c.l.bf16 %v3174_v13  ;;  %v3178_v16 = vld [vmem:[#allocation3 + $0x24] sm:$0xf]  ;;  %v3180_v17 = vld [vmem:[#allocation3 + $0x20] sm:$0xf]  ;;  %v3184_v20 = vld [vmem:[#allocation3 + $0x2c] sm:$0xf] }
  0x68   : > { %v424_v18 = vunpack.c.l.bf16 %v3178_v16  ;;  %v423_v19 = vunpack.c.l.bf16 %v3180_v17  ;;  %v3186_v21 = vld [vmem:[#allocation3 + $0x28] sm:$0xf]  ;;  %v426_v22 = vunpack.c.l.bf16 %v3184_v20  ;;  %v3190_v24 = vld [vmem:[#allocation3 + $0x34] sm:$0xf]  ;;  %v3192_v25 = vld [vmem:[#allocation3 + $0x30] sm:$0xf] }
  0x69   : > { %v425_v23 = vunpack.c.l.bf16 %v3186_v21  ;;  %v428_v26 = vunpack.c.l.bf16 %v3190_v24  ;;  %v427_v27 = vunpack.c.l.bf16 %v3192_v25  ;;  %v3196_v28 = vld [vmem:[#allocation3 + $0x3c] sm:$0xf]  ;;  %v3198_v29 = vld [vmem:[#allocation3 + $0x38] sm:$0xf]  ;;  %p2066_p2 = scmp.ne.s32.totalorder %s2964_s27, 0 }
  0x6a   : > { %v430_v30 = vunpack.c.l.bf16 %v3196_v28  ;;  %v429_v31 = vunpack.c.l.bf16 %v3198_v29 }
  0x6b   : > { %437 = vadd.xlane.f32.xlu1 %v418_v6  ;;  %433 = vadd.xlane.f32.xlu0 %v416_v7 }
  0x6f   : > { %441 = vadd.xlane.f32.xlu1 %v420_v10  ;;  %439 = vadd.xlane.f32.xlu0 %v419_v11 }
  0x73   : > { %445 = vadd.xlane.f32.xlu1 %v422_v14  ;;  %443 = vadd.xlane.f32.xlu0 %v421_v15 }
  0x77   : > { %449 = vadd.xlane.f32.xlu1 %v424_v18  ;;  %447 = vadd.xlane.f32.xlu0 %v423_v19 }
  0x7b   : > { %453 = vadd.xlane.f32.xlu1 %v426_v22  ;;  %451 = vadd.xlane.f32.xlu0 %v425_v23 }
  0x7f   : > { %457 = vadd.xlane.f32.xlu1 %v428_v26  ;;  %455 = vadd.xlane.f32.xlu0 %v427_v27 }
  0x83   : > { %461 = vadd.xlane.f32.xlu1 %v430_v30  ;;  %459 = vadd.xlane.f32.xlu0 %v429_v31 }
  0xf0   : > { %v436_v32 = vpop.xlane.xlu1 %435  ;;  %v432_v33 = vpop.xlane.xlu0 %431 }
  0xf1   : > { %v465_v34 = vmax.f32 %v436_v32, 1.0  ;;  %v463_v35 = vmax.f32 %v432_v33, 1.0 }
  0xf3   : > { %2654 = vrcp.f32 %v465_v34 }
  0xf4   : > { %2656 = vrcp.f32 %v463_v35  ;;  %v438_v36 = vpop.xlane.xlu1 %437  ;;  %v434_v37 = vpop.xlane.xlu0 %433 }
  0xf5   : > { %v466_v38 = vmax.f32 %v438_v36, 1.0  ;;  %v464_v39 = vmax.f32 %v434_v37, 1.0 }
  0xf7   : > { %2658 = vrcp.f32 %v466_v38 }
  0xf8   : > { %2660 = vrcp.f32 %v464_v39  ;;  %v442_v40 = vpop.xlane.xlu1 %441  ;;  %v440_v41 = vpop.xlane.xlu0 %439 }
  0xf9   : > { %v468_v42 = vmax.f32 %v442_v40, 1.0  ;;  %v467_v43 = vmax.f32 %v440_v41, 1.0 }
  0xfb   : > { %2662 = vrcp.f32 %v468_v42 }
  0xfc   : > { %2664 = vrcp.f32 %v467_v43  ;;  %v446_v44 = vpop.xlane.xlu1 %445  ;;  %v444_v45 = vpop.xlane.xlu0 %443 }
  0xfd   : > { %v470_v46 = vmax.f32 %v446_v44, 1.0  ;;  %v469_v47 = vmax.f32 %v444_v45, 1.0 }
  0xff   : > { %2666 = vrcp.f32 %v470_v46 }
 0x100   : > { %v3202_v48 = vpop.eup %2654  ;;  %2668 = vrcp.f32 %v469_v47  ;;  %v450_v49 = vpop.xlane.xlu1 %449 }
 0x101   : > { %v448_v50 = vpop.xlane.xlu0 %447  ;;  %v3204_v51 = vpop.eup %2656  ;;  %v472_v52 = vmax.f32 %v450_v49, 1.0 }
 0x102   : > { %v471_v53 = vmax.f32 %v448_v50, 1.0 }
 0x103   : > { %2670 = vrcp.f32 %v472_v52 }
 0x104   : > { %v3206_v54 = vpop.eup %2658  ;;  %2672 = vrcp.f32 %v471_v53  ;;  %v454_v55 = vpop.xlane.xlu1 %453 }
 0x105   : > { %v452_v56 = vpop.xlane.xlu0 %451  ;;  %v3208_v57 = vpop.eup %2660  ;;  %v474_v58 = vmax.f32 %v454_v55, 1.0 }
 0x106   : > { %v473_v59 = vmax.f32 %v452_v56, 1.0 }
 0x107   : > { %2674 = vrcp.f32 %v474_v58 }
 0x108   : > { %v3210_v60 = vpop.eup %2662  ;;  %2676 = vrcp.f32 %v473_v59  ;;  %v458_v61 = vpop.xlane.xlu1 %457 }
 0x109   : > { %v456_v62 = vpop.xlane.xlu0 %455  ;;  %v3212_v63 = vpop.eup %2664  ;;  %v476_v3 = vmax.f32 %v458_v61, 1.0 }
 0x10a   : > { %v475_v4 = vmax.f32 %v456_v62, 1.0 }
 0x10b   : > { %2678 = vrcp.f32 %v476_v3 }
 0x10c   : > { %v3214_v6 = vpop.eup %2666  ;;  %2680 = vrcp.f32 %v475_v4  ;;  %v462_v7 = vpop.xlane.xlu1 %461 }
 0x10d   : > { %v460_v10 = vpop.xlane.xlu0 %459  ;;  %v3216_v11 = vpop.eup %2668  ;;  %v478_v14 = vmax.f32 %v462_v7, 1.0 }
 0x10e   : > { %v477_v15 = vmax.f32 %v460_v10, 1.0 }
 0x10f   : > { %2682 = vrcp.f32 %v478_v14 }
 0x110   : > { %v3218_v18 = vpop.eup %2670  ;;  %2684 = vrcp.f32 %v477_v15 }
 0x111   : > { %v3220_v19 = vpop.eup %2672 }
 0x114   : > { %v3222_v22 = vpop.eup %2674 }
 0x115   : > { %v3224_v23 = vpop.eup %2676 }
 0x118   : > { %v3226_v26 = vpop.eup %2678 }
 0x119   : > { %v3228_v27 = vpop.eup %2680  ;;  %498 = sbr.rel (%p2066_p2) target bundleno = 771 (0x303), region = 80 }
 0x11c   : > { %v3230_v30 = vpop.eup %2682 }
 0x11d   : > { %v3232_v31 = vpop.eup %2684 }
 0x11e   : > { %v2686_v32 = vld [vmem:[#allocation6 + $0x38] sm:$0xff]   ;;  %v2067_v33 = vcombine.low %v3156_v1, %v3162_v5  ;;  %v2687_v34 = vld [vmem:[#allocation6 + $0x30] sm:$0xff]   ;;  %v2688_v35 = vld [vmem:[#allocation6 + $0x28] sm:$0xff]   ;;  %v2068_v49 = vcombine.low %v3154_v0, %v3158_v2  ;;  %v2069_v50 = vcombine.low %v3168_v9, %v3166_v8  ;;  %v2070_v55 = vcombine.low %v3174_v13, %v3172_v12 }
 0x11f   : > { %2329 = vmatprep.subr.bf16.mxu0 %v2686_v32  ;;  %v2689_v36 = vld [vmem:[#allocation6 + $0x20] sm:$0xff]   ;;  %v2694_v37 = vld [vmem:[#allocation9 + $0x38] sm:$0xff]   ;;  %v2696_v38 = vld [vmem:[#allocation9 + $0x30] sm:$0xff]   ;;  %v2071_v56 = vcombine.low %v3180_v17, %v3178_v16  ;;  %v2072_v61 = vcombine.low %v3186_v21, %v3184_v20  ;;  %v2073_v62 = vcombine.low %v3192_v25, %v3190_v24  ;;  %v2074_v3 = vcombine.low %v3198_v29, %v3196_v28 }
 0x120   : > { %2345 = vmatprep.mubr.bf16.mxu0 %v2067_v33  ;;  %2330 = vmatpush3.bf16.msra.mxu0 %v2686_v32  ;;  %v2690_v39 = vld [vmem:[#allocation6 + $0x18] sm:$0xff]   ;;  %v2698_v40 = vld [vmem:[#allocation9 + $0x28] sm:$0xff]   ;;  %v2691_v41 = vld [vmem:[#allocation6 + $0x10] sm:$0xff]  }
 0x121   : > { %2331 = vmatprep.subr.bf16.mxu0 %v2687_v34  ;;  %2361 = vmatprep.subr.bf16.mxu1 %v2694_v37  ;;  %v2700_v42 = vld [vmem:[#allocation9 + $0x20] sm:$0xff]   ;;  %v2692_v43 = vld [vmem:[#allocation6 + $0x8] sm:$0xff]   ;;  %v2702_v44 = vld [vmem:[#allocation9 + $0x18] sm:$0xff]  }
 0x122   : > { %2362 = vmatpush3.bf16.msra.mxu1 %v2694_v37  ;;  %v2693_v45 = vld [vmem:[#allocation6] sm:$0xff]   ;;  %v2704_v46 = vld [vmem:[#allocation9 + $0x10] sm:$0xff]   ;;  %v3237_v47 = vld [vmem:[#allocation8 + $0x38] sm:$0xff]  }
 0x123   : > { %2363 = vmatprep.subr.bf16.mxu1 %v2696_v38  ;;  %v3244_v52 = vld [vmem:[#allocation8 + $0x30] sm:$0xff]   ;;  %v3248_v53 = vld [vmem:[#allocation8 + $0x28] sm:$0xff]   ;;  %v3256_v58 = vld [vmem:[#allocation8 + $0x20] sm:$0xff]  }
 0x124   : > { %2332 = vmatpush3.bf16.msra.mxu0 %v2687_v34  ;;  %v3260_v59 = vld [vmem:[#allocation8 + $0x18] sm:$0xff]   ;;  %v3271_v4 = vld [vmem:[#allocation8 + $0x10] sm:$0xff]   ;;  %v2706_v7 = vld [vmem:[#allocation9 + $0x8] sm:$0xff]  }
 0x125   : > { %2333 = vmatprep.subr.bf16.mxu0 %v2688_v35  ;;  %v3275_v10 = vld [vmem:[#allocation8 + $0x8] sm:$0xff]   ;;  %v2708_v14 = vld [vmem:[#allocation9] sm:$0xff]   ;;  %v2712_v34 = vld [vmem:[#allocation6 + $0x10] sm:$0xff]  }
 0x126   : > { %2364 = vmatpush3.bf16.msra.mxu1 %v2696_v38  ;;  %v3279_v15 = vld [vmem:[#allocation8] sm:$0xff]   ;;  %v2711_v33 = vld [vmem:[#allocation6 + $0x8] sm:$0xff]  }
 0x127   : > { %2365 = vmatprep.subr.bf16.mxu1 %v2698_v40  ;;  %v2710_v32 = vld [vmem:[#allocation6] sm:$0xff]  }
 0x128   : > { %2334 = vmatpush3.bf16.msra.mxu0 %v2688_v35  ;;  %v2713_v35 = vld [vmem:[#allocation6 + $0x18] sm:$0xff]  }
 0x129   : > { %2335 = vmatprep.subr.bf16.mxu0 %v2689_v36 }
 0x12a   : > { %2366 = vmatpush3.bf16.msra.mxu1 %v2698_v40 }
 0x12b   : > { %2367 = vmatprep.subr.bf16.mxu1 %v2700_v42 }
 0x12c   : > { %2336 = vmatpush3.bf16.msra.mxu0 %v2689_v36 }
 0x12d   : > { %2337 = vmatprep.subr.bf16.mxu0 %v2690_v39 }
 0x12e   : > { %2368 = vmatpush3.bf16.msra.mxu1 %v2700_v42 }
 0x12f   : > { %2369 = vmatprep.subr.bf16.mxu1 %v2702_v44 }
 0x130   : > { %2338 = vmatpush3.bf16.msra.mxu0 %v2690_v39 }
 0x131   : > { %2339 = vmatprep.subr.bf16.mxu0 %v2691_v41 }
 0x132   : > { %2370 = vmatpush3.bf16.msra.mxu1 %v2702_v44 }
 0x133   : > { %2371 = vmatprep.subr.bf16.mxu1 %v2704_v46 }
 0x134   : > { %2340 = vmatpush3.bf16.msra.mxu0 %v2691_v41 }
 0x135   : > { %2341 = vmatprep.subr.bf16.mxu0 %v2692_v43 }
 0x136   : > { %2372 = vmatpush3.bf16.msra.mxu1 %v2704_v46 }
 0x137   : > { %2373 = vmatprep.subr.bf16.mxu1 %v2706_v7 }
 0x138   : > { %2342 = vmatpush3.bf16.msra.mxu0 %v2692_v43 }
 0x139   : > { %2343 = vmatprep.subr.bf16.mxu0 %v2693_v45 }
 0x13a   : > { %2374 = vmatpush3.bf16.msra.mxu1 %v2706_v7 }
 0x13b   : > { %2375 = vmatprep.subr.bf16.mxu1 %v2708_v14 }
 0x13c   : > { %2344 = vmatpush3.bf16.msra.mxu0 %v2693_v45 }
 0x13d   : > { %2393 = vmatprep.subr.bf16.mxu0 %v3237_v47 }
 0x13e   : > { %2376 = vmatpush3.bf16.msra.mxu1 %v2708_v14 }
 0x13f   : > { %2346 = vmatmul.mubr.bf16.vlgmr.msra.gmra.mxu0 %v2068_v49  ;;  %2521 = vmatprep.subr.bf16.mxu1 %v3237_v47 }
 0x140   : > { %2349 = vmatprep.mubr.bf16.mxu0 %v2069_v50  ;;  %2394 = vmatpush3.bf16.msra.mxu0 %v3237_v47 }
 0x141   : > { %2395 = vmatprep.subr.bf16.mxu0 %v3244_v52 }
 0x144   : > { %2396 = vmatpush3.bf16.msra.mxu0 %v3244_v52 }
 0x145   : > { %2397 = vmatprep.subr.bf16.mxu0 %v3248_v53 }
 0x147   : > { %2350 = vmatmul.mubr.bf16.gmra.mxu0 %v2070_v55 }
 0x148   : > { %2353 = vmatprep.mubr.bf16.mxu0 %v2071_v56  ;;  %2398 = vmatpush3.bf16.msra.mxu0 %v3248_v53 }
 0x149   : > { %2399 = vmatprep.subr.bf16.mxu0 %v3256_v58 }
 0x14c   : > { %2400 = vmatpush3.bf16.msra.mxu0 %v3256_v58 }
 0x14d   : > { %2401 = vmatprep.subr.bf16.mxu0 %v3260_v59 }
 0x14f   : > { %2354 = vmatmul.mubr.bf16.gmra.mxu0 %v2072_v61 }
 0x150   : > { %2357 = vmatprep.mubr.bf16.mxu0 %v2073_v62  ;;  %2402 = vmatpush3.bf16.msra.mxu0 %v3260_v59 }
 0x151   : > { %2403 = vmatprep.subr.bf16.mxu0 %v3271_v4 }
 0x154   : > { %2404 = vmatpush3.bf16.msra.mxu0 %v3271_v4 }
 0x155   : > { %2405 = vmatprep.subr.bf16.mxu0 %v3275_v10 }
 0x157   : > { %2358 = vmatmul.mubr.bf16.gmra.mxu0 %v2074_v3 }
 0x158   : > { %2406 = vmatpush3.bf16.msra.mxu0 %v3275_v10  ;;  %2409 = vmatprep.mubr.bf16.mxu0 %v2710_v32 }
 0x159   : > { %2407 = vmatprep.subr.bf16.mxu0 %v3279_v15 }
 0x15c   : > { %2408 = vmatpush3.bf16.msra.mxu0 %v3279_v15 }
 0x15f   : > { %2410 = vmatmul.mubr.bf16.vlgmr.msra.gmra.mxu0 %v2711_v33 }
 0x160   : > { %2413 = vmatprep.mubr.bf16.mxu0 %v2712_v34 }
 0x167   : > { %2414 = vmatmul.mubr.bf16.gmra.mxu0 %v2713_v35 }
 0x1ff   : > { %v2347_v36 = vpop.f32.mrf.mxu0 }
 0x200   : > { %v762_v43 = vmul.f32 %v3202_v48, %v2347_v36 }
 0x201   : > { %v697_v37 = vpop.f32.mrf.mxu0 }
 0x202   : > { %v760_v41 = vmul.f32 %v3204_v51, %v697_v37 }
 0x203   : > { %v2348_v38 = vpop.f32.mrf.mxu0 }
 0x204   : > { %v763_v39 = vmul.f32 %v3206_v54, %v2348_v38 }
 0x205   : > { %v700_v40 = vpop.f32.mrf.mxu0 }
 0x206   : > { %v761_v42 = vmul.f32 %v3208_v57, %v700_v40  ;;  %v777_v46 = vpack.c.bf16 %v763_v39, %v762_v43 }
 0x207   : > { %v2351_v44 = vpop.f32.mrf.mxu0 }
 0x208   : > { %v776_v45 = vpack.c.bf16 %v761_v42, %v760_v41  ;;  %v766_v3 = vmul.f32 %v3216_v11, %v2351_v44 }
 0x209   : > { %v713_v49 = vpop.f32.mrf.mxu0 }
 0x20a   : > { %2377 = vmatprep.mubr.bf16.mxu1 %v776_v45  ;;  %v764_v61 = vmul.f32 %v3212_v63, %v713_v49  ;;  %v2714_v49 = vld [vmem:[#allocation6 + $0x20] sm:$0xff]  }
 0x20b   : > { %v2352_v50 = vpop.f32.mrf.mxu0  ;;  %2378 = vmatmul.mubr.bf16.vlgmr.msra.gmra.mxu1 %v777_v46 }
 0x20c   : > { %2529 = vmatpush3.bf16.msra.mxu1 %v3237_v47  ;;  %v767_v55 = vmul.f32 %v3214_v6, %v2352_v50 }
 0x20d   : > { %v716_v56 = vpop.f32.mrf.mxu0  ;;  %2522 = vmatprep.subr.bf16.mxu1 %v3244_v52 }
 0x20e   : > { %v765_v62 = vmul.f32 %v3210_v60, %v716_v56  ;;  %v779_v32 = vpack.c.bf16 %v767_v55, %v766_v3  ;;  %v2716_v55 = vld [vmem:[#allocation6 + $0x30] sm:$0xff]   ;;  %v2717_v56 = vld [vmem:[#allocation6 + $0x38] sm:$0xff]  }
 0x20f   : > { %v2355_v7 = vpop.f32.mrf.mxu0 }
 0x210   : > { %v778_v14 = vpack.c.bf16 %v765_v62, %v764_v61  ;;  %2530 = vmatpush3.bf16.msra.mxu1 %v3244_v52  ;;  %v770_v52 = vmul.f32 %v3224_v23, %v2355_v7 }
 0x211   : > { %v729_v33 = vpop.f32.mrf.mxu0  ;;  %2523 = vmatprep.subr.bf16.mxu1 %v3248_v53 }
 0x212   : > { %2381 = vmatprep.mubr.bf16.mxu1 %v778_v14  ;;  %v768_v36 = vmul.f32 %v3220_v19, %v729_v33 }
 0x213   : > { %v2356_v47 = vpop.f32.mrf.mxu0  ;;  %2382 = vmatmul.mubr.bf16.gmra.mxu1 %v779_v32 }
 0x214   : > { %2531 = vmatpush3.bf16.msra.mxu1 %v3248_v53  ;;  %v771_v34 = vmul.f32 %v3222_v22, %v2356_v47 }
 0x215   : > { %v732_v35 = vpop.f32.mrf.mxu0  ;;  %2524 = vmatprep.subr.bf16.mxu1 %v3256_v58 }
 0x216   : > { %v769_v37 = vmul.f32 %v3218_v18, %v732_v35  ;;  %v781_v40 = vpack.c.bf16 %v771_v34, %v770_v52 }
 0x217   : > { %v2359_v38 = vpop.f32.mrf.mxu0 }
 0x218   : > { %v780_v39 = vpack.c.bf16 %v769_v37, %v768_v36  ;;  %2532 = vmatpush3.bf16.msra.mxu1 %v3256_v58  ;;  %v774_v58 = vmul.f32 %v3232_v31, %v2359_v38 }
 0x219   : > { %v745_v41 = vpop.f32.mrf.mxu0  ;;  %2525 = vmatprep.subr.bf16.mxu1 %v3260_v59 }
 0x21a   : > { %2385 = vmatprep.mubr.bf16.mxu1 %v780_v39  ;;  %v772_v44 = vmul.f32 %v3228_v27, %v745_v41 }
 0x21b   : > { %v2360_v53 = vpop.f32.mrf.mxu0  ;;  %2386 = vmatmul.mubr.bf16.gmra.mxu1 %v781_v40 }
 0x21c   : > { %2533 = vmatpush3.bf16.msra.mxu1 %v3260_v59  ;;  %v775_v42 = vmul.f32 %v3230_v30, %v2360_v53  ;;  %v2715_v59 = vld [vmem:[#allocation6 + $0x28] sm:$0xff]  }
 0x21d   : > { %v748_v43 = vpop.f32.mrf.mxu0  ;;  %2526 = vmatprep.subr.bf16.mxu1 %v3271_v4 }
 0x21e   : > { %v773_v45 = vmul.f32 %v3226_v26, %v748_v43  ;;  %v783_v50 = vpack.c.bf16 %v775_v42, %v774_v58 }
 0x220   : > { %v782_v46 = vpack.c.bf16 %v773_v45, %v772_v44  ;;  %2534 = vmatpush3.bf16.msra.mxu1 %v3271_v4  ;;  %v2411_v4 = vpop.f32.mrf.mxu0 }
 0x221   : > { %2527 = vmatprep.subr.bf16.mxu1 %v3275_v10 }
 0x222   : > { %2389 = vmatprep.mubr.bf16.mxu1 %v782_v46  ;;  %v1059_v61 = vpop.f32.mrf.mxu0 }
 0x223   : > { %2390 = vmatmul.mubr.bf16.gmra.mxu1 %v783_v50 }
 0x224   : > { %2535 = vmatpush3.bf16.msra.mxu1 %v3275_v10  ;;  %2417 = vmatprep.mubr.bf16.mxu1 %v2714_v49  ;;  %v2412_v62 = vpop.f32.mrf.mxu0  ;;  %v3318_v10 = vld [vmem:[%s3467_s4] ss:$0 sm:$0xff] }
 0x225   : > { %2528 = vmatprep.subr.bf16.mxu1 %v3279_v15 }
 0x226   : > { %v1062_v3 = vpop.f32.mrf.mxu0 }
 0x228   : > { %2536 = vmatpush3.bf16.msra.mxu1 %v3279_v15  ;;  %v2415_v14 = vpop.f32.mrf.mxu0 }
 0x22a   : > { %v1075_v34 = vpop.f32.mrf.mxu0 }
 0x22b   : > { %2418 = vmatmul.mubr.bf16.vlgmr.msra.gmra.mxu1 %v2715_v59 }
 0x22c   : > { %2421 = vmatprep.mubr.bf16.mxu1 %v2716_v55  ;;  %v2416_v41 = vpop.f32.mrf.mxu0 }
 0x22e   : > { %v1078_v55 = vpop.f32.mrf.mxu0 }
 0x233   : > { %2422 = vmatmul.mubr.bf16.gmra.mxu1 %v2717_v56 }
 0x2cb   : > { %v2379_v7 = vpop.f32.mrf.mxu1 }
 0x2cc   : > { %v1068_v32 = vadd.f32 %v2411_v4, %v2379_v7 }
 0x2cd   : > { %v866_v33 = vpop.f32.mrf.mxu1 }
 0x2ce   : > { %v1060_v47 = vadd.f32 %v1059_v61, %v866_v33  ;;  %v1131_v35 = vadd.f32 %v3318_v10, %v1068_v32 }
 0x2cf   : > { %v2380_v15 = vpop.f32.mrf.mxu1 }
 0x2d0   : > { %v1071_v36 = vadd.f32 %v2412_v62, %v2380_v15  ;;  %v1129_v52 = vadd.f32 %v3318_v10, %v1060_v47  ;;  %v1147_v53 = vmax.f32 %v1131_v35, 0.0 }
 0x2d1   : > { %v869_v37 = vpop.f32.mrf.mxu1 }
 0x2d2   : > { %v1132_v38 = vadd.f32 %v3318_v10, %v1071_v36  ;;  %v1063_v39 = vadd.f32 %v1062_v3, %v869_v37  ;;  %v1145_v58 = vmax.f32 %v1129_v52, 0.0 }
 0x2d3   : > { %v2383_v40 = vpop.f32.mrf.mxu1 }
 0x2d4   : > { %v1148_v42 = vmax.f32 %v1132_v38, 0.0  ;;  %v1130_v43 = vadd.f32 %v3318_v10, %v1063_v39  ;;  %v1084_v44 = vadd.f32 %v2415_v14, %v2383_v40 }
 0x2d5   : > { %v882_v45 = vpop.f32.mrf.mxu1 }
 0x2d6   : > { %v2194_v46 = vpack.c.bf16 %v1148_v42, %v1147_v53  ;;  %v1146_v49 = vmax.f32 %v1130_v43, 0.0  ;;  %v1076_v50 = vadd.f32 %v1075_v34, %v882_v45  ;;  %v1135_v4 = vadd.f32 %v3318_v10, %v1084_v44 }
 0x2d7   : > { %v2384_v59 = vpop.f32.mrf.mxu1 }
 0x2d8   : > { %2226 = vst [vmem:[#allocation2 + $0x8] sm:$0xff] %v2194_v46   ;;  %v2189_v56 = vpack.c.bf16 %v1146_v49, %v1145_v58  ;;  %v1087_v61 = vadd.f32 %v2416_v41, %v2384_v59  ;;  %v1133_v3 = vadd.f32 %v3318_v10, %v1076_v50  ;;  %v1151_v33 = vmax.f32 %v1135_v4, 0.0 }
 0x2d9   : > { %v885_v62 = vpop.f32.mrf.mxu1 }
 0x2da   : > { %2190 = vst [vmem:[#allocation2] sm:$0xff] %v2189_v56   ;;  %v1136_v7 = vadd.f32 %v3318_v10, %v1087_v61  ;;  %v1079_v32 = vadd.f32 %v1078_v55, %v885_v62  ;;  %v1149_v35 = vmax.f32 %v1133_v3, 0.0 }
 0x2db   : > { %v2387_v14 = vpop.f32.mrf.mxu1 }
 0x2dc   : > { %v1152_v47 = vmax.f32 %v1136_v7, 0.0  ;;  %v1134_v15 = vadd.f32 %v3318_v10, %v1079_v32 }
 0x2dd   : > { %v898_v34 = vpop.f32.mrf.mxu1 }
 0x2de   : > { %v2204_v36 = vpack.c.bf16 %v1152_v47, %v1151_v33  ;;  %v1150_v37 = vmax.f32 %v1134_v15, 0.0 }
 0x2df   : > { %v2388_v52 = vpop.f32.mrf.mxu1 }
 0x2e0   : > { %2228 = vst [vmem:[#allocation2 + $0x18] sm:$0xff] %v2204_v36   ;;  %v2199_v38 = vpack.c.bf16 %v1150_v37, %v1149_v35 }
 0x2e1   : > { %v901_v39 = vpop.f32.mrf.mxu1 }
 0x2e2   : > { %2227 = vst [vmem:[#allocation2 + $0x10] sm:$0xff] %v2199_v38  }
 0x2e3   : > { %v2391_v40 = vpop.f32.mrf.mxu1 }
 0x2e5   : > { %v914_v41 = vpop.f32.mrf.mxu1 }
 0x2e7   : > { %v2392_v53 = vpop.f32.mrf.mxu1 }
 0x2e9   : > { %v917_v42 = vpop.f32.mrf.mxu1 }
 0x2eb   : > { %v2419_v43 = vpop.f32.mrf.mxu1 }
 0x2ec   : > { %v1100_v44 = vadd.f32 %v2419_v43, %v2387_v14 }
 0x2ed   : > { %v1091_v45 = vpop.f32.mrf.mxu1 }
 0x2ee   : > { %v1092_v58 = vadd.f32 %v1091_v45, %v898_v34  ;;  %v1139_v49 = vadd.f32 %v3318_v10, %v1100_v44 }
 0x2ef   : > { %v2420_v46 = vpop.f32.mrf.mxu1 }
 0x2f0   : > { %v1103_v50 = vadd.f32 %v2420_v46, %v2388_v52  ;;  %v1137_v55 = vadd.f32 %v3318_v10, %v1092_v58  ;;  %v1155_v62 = vmax.f32 %v1139_v49, 0.0 }
 0x2f1   : > { %v1094_v59 = vpop.f32.mrf.mxu1 }
 0x2f2   : > { %v1140_v56 = vadd.f32 %v3318_v10, %v1103_v50  ;;  %v1095_v4 = vadd.f32 %v1094_v59, %v901_v39  ;;  %v1153_v14 = vmax.f32 %v1137_v55, 0.0 }
 0x2f3   : > { %v2423_v61 = vpop.f32.mrf.mxu1 }
 0x2f4   : > { %v1156_v3 = vmax.f32 %v1140_v56, 0.0  ;;  %v1138_v7 = vadd.f32 %v3318_v10, %v1095_v4  ;;  %v1116_v32 = vadd.f32 %v2423_v61, %v2391_v40 }
 0x2f5   : > { %v1107_v33 = vpop.f32.mrf.mxu1 }
 0x2f6   : > { %v2214_v47 = vpack.c.bf16 %v1156_v3, %v1155_v62  ;;  %v1154_v15 = vmax.f32 %v1138_v7, 0.0  ;;  %v1108_v34 = vadd.f32 %v1107_v33, %v914_v41  ;;  %v1143_v37 = vadd.f32 %v3318_v10, %v1116_v32 }
 0x2f7   : > { %v2424_v35 = vpop.f32.mrf.mxu1 }
 0x2f8   : > { %2230 = vst [vmem:[#allocation2 + $0x28] sm:$0xff] %v2214_v47   ;;  %v2209_v36 = vpack.c.bf16 %v1154_v15, %v1153_v14  ;;  %v1119_v52 = vadd.f32 %v2424_v35, %v2392_v53  ;;  %v1141_v39 = vadd.f32 %v3318_v10, %v1108_v34  ;;  %v1159_v45 = vmax.f32 %v1143_v37, 0.0 }
 0x2f9   : > { %v1110_v38 = vpop.f32.mrf.mxu1 }
 0x2fa   : > { %2229 = vst [vmem:[#allocation2 + $0x20] sm:$0xff] %v2209_v36   ;;  %v1144_v43 = vadd.f32 %v3318_v10, %v1119_v52  ;;  %v1111_v44 = vadd.f32 %v1110_v38, %v917_v42  ;;  %v1157_v46 = vmax.f32 %v1141_v39, 0.0 }
 0x2fc   : > { %v1160_v40 = vmax.f32 %v1144_v43, 0.0  ;;  %v1142_v58 = vadd.f32 %v3318_v10, %v1111_v44 }
 0x2fe   : > { %v2224_v49 = vpack.c.bf16 %v1160_v40, %v1159_v45  ;;  %v1158_v41 = vmax.f32 %v1142_v58, 0.0 }
 0x300   : > { %2232 = vst [vmem:[#allocation2 + $0x38] sm:$0xff] %v2224_v49   ;;  %v2219_v50 = vpack.c.bf16 %v1158_v41, %v1157_v46 }
 0x302   : > { %2231 = vst [vmem:[#allocation2 + $0x30] sm:$0xff] %v2219_v50  }
 0x303 PF: > { %p2124_p3 = scmp.ne.s32.totalorder %s2964_s27, 1 }
 0x305   : > { %1246 = sbr.rel (%p2124_p3) target bundleno = 1259 (0x4eb), region = 84 }
 0x30a   : > { %v2718_v53 = vld [vmem:[#allocation2 + $0x38] sm:$0xff]   ;;  %v2125_v59 = vcombine.low %v3156_v1, %v3162_v5  ;;  %v2719_v55 = vld [vmem:[#allocation2 + $0x30] sm:$0xff]   ;;  %v2720_v10 = vld [vmem:[#allocation2 + $0x28] sm:$0xff]   ;;  %v2126_v47 = vcombine.low %v3154_v0, %v3158_v2  ;;  %v2127_v15 = vcombine.low %v3168_v9, %v3166_v8  ;;  %v2128_v0 = vcombine.low %v3174_v13, %v3172_v12 }
 0x30b   : > { %2425 = vmatprep.subr.bf16.mxu0 %v2718_v53  ;;  %v2721_v42 = vld [vmem:[#allocation2 + $0x20] sm:$0xff]   ;;  %v2726_v56 = vld [vmem:[#allocation12 + $0x38] sm:$0xff]   ;;  %v2728_v4 = vld [vmem:[#allocation12 + $0x30] sm:$0xff]   ;;  %v2129_v2 = vcombine.low %v3180_v17, %v3178_v16  ;;  %v2130_v12 = vcombine.low %v3186_v21, %v3184_v20  ;;  %v2131_v13 = vcombine.low %v3192_v25, %v3190_v24  ;;  %v2132_v16 = vcombine.low %v3198_v29, %v3196_v28 }
 0x30c   : > { %2441 = vmatprep.mubr.bf16.mxu0 %v2125_v59  ;;  %2426 = vmatpush3.bf16.msra.mxu0 %v2718_v53  ;;  %v2722_v61 = vld [vmem:[#allocation2 + $0x18] sm:$0xff]   ;;  %v2730_v62 = vld [vmem:[#allocation12 + $0x28] sm:$0xff]   ;;  %v2723_v1 = vld [vmem:[#allocation2 + $0x10] sm:$0xff]  }
 0x30d   : > { %2427 = vmatprep.subr.bf16.mxu0 %v2719_v55  ;;  %2457 = vmatprep.subr.bf16.mxu1 %v2726_v56  ;;  %v2732_v5 = vld [vmem:[#allocation12 + $0x20] sm:$0xff]   ;;  %v2724_v3 = vld [vmem:[#allocation2 + $0x8] sm:$0xff]   ;;  %v2734_v7 = vld [vmem:[#allocation12 + $0x18] sm:$0xff]  }
 0x30e   : > { %2458 = vmatpush3.bf16.msra.mxu1 %v2726_v56  ;;  %v2725_v32 = vld [vmem:[#allocation2] sm:$0xff]   ;;  %v2736_v33 = vld [vmem:[#allocation12 + $0x10] sm:$0xff]   ;;  %v3339_v14 = vld [vmem:[#allocation11 + $0x38] sm:$0xff]  }
 0x30f   : > { %2459 = vmatprep.subr.bf16.mxu1 %v2728_v4  ;;  %v3346_v34 = vld [vmem:[#allocation11 + $0x30] sm:$0xff]   ;;  %v3350_v35 = vld [vmem:[#allocation11 + $0x28] sm:$0xff]   ;;  %v3358_v8 = vld [vmem:[#allocation11 + $0x20] sm:$0xff]  }
 0x310   : > { %2428 = vmatpush3.bf16.msra.mxu0 %v2719_v55  ;;  %v3362_v9 = vld [vmem:[#allocation11 + $0x18] sm:$0xff]   ;;  %v3373_v17 = vld [vmem:[#allocation11 + $0x10] sm:$0xff]   ;;  %v2738_v20 = vld [vmem:[#allocation12 + $0x8] sm:$0xff]  }
 0x311   : > { %2429 = vmatprep.subr.bf16.mxu0 %v2720_v10  ;;  %v3377_v21 = vld [vmem:[#allocation11 + $0x8] sm:$0xff]   ;;  %v2740_v24 = vld [vmem:[#allocation12] sm:$0xff]   ;;  %v2744_v36 = vld [vmem:[#allocation2 + $0x10] sm:$0xff]  }
 0x312   : > { %2460 = vmatpush3.bf16.msra.mxu1 %v2728_v4  ;;  %v3381_v25 = vld [vmem:[#allocation11] sm:$0xff]   ;;  %v2743_v29 = vld [vmem:[#allocation2 + $0x8] sm:$0xff]   ;;  %v2745_v37 = vld [vmem:[#allocation2 + $0x18] sm:$0xff]  }
 0x313   : > { %2461 = vmatprep.subr.bf16.mxu1 %v2730_v62  ;;  %v2742_v28 = vld [vmem:[#allocation2] sm:$0xff]  }
 0x314   : > { %2430 = vmatpush3.bf16.msra.mxu0 %v2720_v10 }
 0x315   : > { %2431 = vmatprep.subr.bf16.mxu0 %v2721_v42 }
 0x316   : > { %2462 = vmatpush3.bf16.msra.mxu1 %v2730_v62 }
 0x317   : > { %2463 = vmatprep.subr.bf16.mxu1 %v2732_v5 }
 0x318   : > { %2432 = vmatpush3.bf16.msra.mxu0 %v2721_v42 }
 0x319   : > { %2433 = vmatprep.subr.bf16.mxu0 %v2722_v61 }
 0x31a   : > { %2464 = vmatpush3.bf16.msra.mxu1 %v2732_v5 }
 0x31b   : > { %2465 = vmatprep.subr.bf16.mxu1 %v2734_v7 }
 0x31c   : > { %2434 = vmatpush3.bf16.msra.mxu0 %v2722_v61 }
 0x31d   : > { %2435 = vmatprep.subr.bf16.mxu0 %v2723_v1 }
 0x31e   : > { %2466 = vmatpush3.bf16.msra.mxu1 %v2734_v7 }
 0x31f   : > { %2467 = vmatprep.subr.bf16.mxu1 %v2736_v33 }
 0x320   : > { %2436 = vmatpush3.bf16.msra.mxu0 %v2723_v1 }
 0x321   : > { %2437 = vmatprep.subr.bf16.mxu0 %v2724_v3 }
 0x322   : > { %2468 = vmatpush3.bf16.msra.mxu1 %v2736_v33 }
 0x323   : > { %2469 = vmatprep.subr.bf16.mxu1 %v2738_v20 }
 0x324   : > { %2438 = vmatpush3.bf16.msra.mxu0 %v2724_v3 }
 0x325   : > { %2439 = vmatprep.subr.bf16.mxu0 %v2725_v32 }
 0x326   : > { %2470 = vmatpush3.bf16.msra.mxu1 %v2738_v20 }
 0x327   : > { %2471 = vmatprep.subr.bf16.mxu1 %v2740_v24 }
 0x328   : > { %2440 = vmatpush3.bf16.msra.mxu0 %v2725_v32 }
 0x329   : > { %2489 = vmatprep.subr.bf16.mxu0 %v3339_v14 }
 0x32a   : > { %2472 = vmatpush3.bf16.msra.mxu1 %v2740_v24 }
 0x32b   : > { %2442 = vmatmul.mubr.bf16.vlgmr.msra.gmra.mxu0 %v2126_v47  ;;  %2537 = vmatprep.subr.bf16.mxu1 %v3339_v14 }
 0x32c   : > { %2445 = vmatprep.mubr.bf16.mxu0 %v2127_v15  ;;  %2490 = vmatpush3.bf16.msra.mxu0 %v3339_v14 }
 0x32d   : > { %2491 = vmatprep.subr.bf16.mxu0 %v3346_v34 }
 0x330   : > { %2492 = vmatpush3.bf16.msra.mxu0 %v3346_v34 }
 0x331   : > { %2493 = vmatprep.subr.bf16.mxu0 %v3350_v35 }
 0x333   : > { %2446 = vmatmul.mubr.bf16.gmra.mxu0 %v2128_v0 }
 0x334   : > { %2449 = vmatprep.mubr.bf16.mxu0 %v2129_v2  ;;  %2494 = vmatpush3.bf16.msra.mxu0 %v3350_v35  ;;  %v3420_v2 = vld [vmem:[%s3470_s7] ss:$0 sm:$0xff] }
 0x335   : > { %2495 = vmatprep.subr.bf16.mxu0 %v3358_v8 }
 0x338   : > { %2496 = vmatpush3.bf16.msra.mxu0 %v3358_v8 }
 0x339   : > { %2497 = vmatprep.subr.bf16.mxu0 %v3362_v9 }
 0x33b   : > { %2450 = vmatmul.mubr.bf16.gmra.mxu0 %v2130_v12 }
 0x33c   : > { %2453 = vmatprep.mubr.bf16.mxu0 %v2131_v13  ;;  %2498 = vmatpush3.bf16.msra.mxu0 %v3362_v9 }
 0x33d   : > { %2499 = vmatprep.subr.bf16.mxu0 %v3373_v17 }
 0x340   : > { %2500 = vmatpush3.bf16.msra.mxu0 %v3373_v17 }
 0x341   : > { %2501 = vmatprep.subr.bf16.mxu0 %v3377_v21 }
 0x343   : > { %2454 = vmatmul.mubr.bf16.gmra.mxu0 %v2132_v16 }
 0x344   : > { %2502 = vmatpush3.bf16.msra.mxu0 %v3377_v21  ;;  %2505 = vmatprep.mubr.bf16.mxu0 %v2742_v28 }
 0x345   : > { %2503 = vmatprep.subr.bf16.mxu0 %v3381_v25 }
 0x348   : > { %2504 = vmatpush3.bf16.msra.mxu0 %v3381_v25 }
 0x34b   : > { %2506 = vmatmul.mubr.bf16.vlgmr.msra.gmra.mxu0 %v2743_v29 }
 0x34c   : > { %2509 = vmatprep.mubr.bf16.mxu0 %v2744_v36 }
 0x353   : > { %2510 = vmatmul.mubr.bf16.gmra.mxu0 %v2745_v37 }
 0x3eb   : > { %v2443_v52 = vpop.f32.mrf.mxu0 }
 0x3ec   : > { %v1510_v58 = vmul.f32 %v3202_v48, %v2443_v52 }
 0x3ed   : > { %v1445_v38 = vpop.f32.mrf.mxu0 }
 0x3ee   : > { %v1508_v45 = vmul.f32 %v3204_v51, %v1445_v38 }
 0x3ef   : > { %v2444_v39 = vpop.f32.mrf.mxu0 }
 0x3f0   : > { %v1511_v43 = vmul.f32 %v3206_v54, %v2444_v39 }
 0x3f1   : > { %v1448_v44 = vpop.f32.mrf.mxu0 }
 0x3f2   : > { %v1509_v40 = vmul.f32 %v3208_v57, %v1448_v44  ;;  %v1525_v41 = vpack.c.bf16 %v1511_v43, %v1510_v58 }
 0x3f3   : > { %v2447_v46 = vpop.f32.mrf.mxu0 }
 0x3f4   : > { %v1524_v49 = vpack.c.bf16 %v1509_v40, %v1508_v45  ;;  %v1514_v48 = vmul.f32 %v3216_v11, %v2447_v46 }
 0x3f5   : > { %v1461_v50 = vpop.f32.mrf.mxu0 }
 0x3f6   : > { %2473 = vmatprep.mubr.bf16.mxu1 %v1524_v49  ;;  %v1512_v51 = vmul.f32 %v3212_v63, %v1461_v50 }
 0x3f7   : > { %v2448_v53 = vpop.f32.mrf.mxu0  ;;  %2474 = vmatmul.mubr.bf16.vlgmr.msra.gmra.mxu1 %v1525_v41 }
 0x3f8   : > { %2545 = vmatpush3.bf16.msra.mxu1 %v3339_v14  ;;  %v1515_v59 = vmul.f32 %v3214_v6, %v2448_v53  ;;  %v2746_v14 = vld [vmem:[#allocation2 + $0x20] sm:$0xff]  }
 0x3f9   : > { %v1464_v55 = vpop.f32.mrf.mxu0  ;;  %2538 = vmatprep.subr.bf16.mxu1 %v3346_v34 }
 0x3fa   : > { %v1513_v54 = vmul.f32 %v3210_v60, %v1464_v55  ;;  %v1527_v42 = vpack.c.bf16 %v1515_v59, %v1514_v48 }
 0x3fb   : > { %v2451_v57 = vpop.f32.mrf.mxu0 }
 0x3fc   : > { %v1526_v10 = vpack.c.bf16 %v1513_v54, %v1512_v51  ;;  %2546 = vmatpush3.bf16.msra.mxu1 %v3346_v34  ;;  %v1518_v61 = vmul.f32 %v3224_v23, %v2451_v57 }
 0x3fd   : > { %v1477_v56 = vpop.f32.mrf.mxu0  ;;  %2539 = vmatprep.subr.bf16.mxu1 %v3350_v35 }
 0x3fe   : > { %2477 = vmatprep.mubr.bf16.mxu1 %v1526_v10  ;;  %v1516_v60 = vmul.f32 %v3220_v19, %v1477_v56 }
 0x3ff   : > { %v2452_v4 = vpop.f32.mrf.mxu0  ;;  %2478 = vmatmul.mubr.bf16.gmra.mxu1 %v1527_v42 }
 0x400   : > { %2547 = vmatpush3.bf16.msra.mxu1 %v3350_v35  ;;  %v1519_v6 = vmul.f32 %v3222_v22, %v2452_v4 }
 0x401   : > { %v1480_v63 = vpop.f32.mrf.mxu0  ;;  %2540 = vmatprep.subr.bf16.mxu1 %v3358_v8 }
 0x402   : > { %v1517_v11 = vmul.f32 %v3218_v18, %v1480_v63  ;;  %v1529_v5 = vpack.c.bf16 %v1519_v6, %v1518_v61 }
 0x403   : > { %v2455_v62 = vpop.f32.mrf.mxu0 }
 0x404   : > { %v1528_v1 = vpack.c.bf16 %v1517_v11, %v1516_v60  ;;  %2548 = vmatpush3.bf16.msra.mxu1 %v3358_v8  ;;  %v1522_v32 = vmul.f32 %v3232_v31, %v2455_v62 }
 0x405   : > { %v1493_v3 = vpop.f32.mrf.mxu0  ;;  %2541 = vmatprep.subr.bf16.mxu1 %v3362_v9 }
 0x406   : > { %2481 = vmatprep.mubr.bf16.mxu1 %v1528_v1  ;;  %v1520_v18 = vmul.f32 %v3228_v27, %v1493_v3  ;;  %v2749_v27 = vld [vmem:[#allocation2 + $0x38] sm:$0xff]  }
 0x407   : > { %v2456_v7 = vpop.f32.mrf.mxu0  ;;  %2482 = vmatmul.mubr.bf16.gmra.mxu1 %v1529_v5 }
 0x408   : > { %2549 = vmatpush3.bf16.msra.mxu1 %v3362_v9  ;;  %v1523_v22 = vmul.f32 %v3230_v30, %v2456_v7  ;;  %v2747_v30 = vld [vmem:[#allocation2 + $0x28] sm:$0xff]  }
 0x409   : > { %v1496_v19 = vpop.f32.mrf.mxu0  ;;  %2542 = vmatprep.subr.bf16.mxu1 %v3373_v17 }
 0x40a   : > { %v1521_v23 = vmul.f32 %v3226_v26, %v1496_v19  ;;  %v1531_v47 = vpack.c.bf16 %v1523_v22, %v1522_v32  ;;  %v2748_v26 = vld [vmem:[#allocation2 + $0x30] sm:$0xff]  }
 0x40b   : > { %v2507_v31 = vpop.f32.mrf.mxu0 }
 0x40c   : > { %v1530_v33 = vpack.c.bf16 %v1521_v23, %v1520_v18  ;;  %2550 = vmatpush3.bf16.msra.mxu1 %v3373_v17 }
 0x40d   : > { %2543 = vmatprep.subr.bf16.mxu1 %v3377_v21  ;;  %v1807_v15 = vpop.f32.mrf.mxu0 }
 0x40e   : > { %2485 = vmatprep.mubr.bf16.mxu1 %v1530_v33 }
 0x40f   : > { %2486 = vmatmul.mubr.bf16.gmra.mxu1 %v1531_v47  ;;  %v2508_v34 = vpop.f32.mrf.mxu0 }
 0x410   : > { %2551 = vmatpush3.bf16.msra.mxu1 %v3377_v21  ;;  %2513 = vmatprep.mubr.bf16.mxu1 %v2746_v14 }
 0x411   : > { %2544 = vmatprep.subr.bf16.mxu1 %v3381_v25  ;;  %v1810_v35 = vpop.f32.mrf.mxu0 }
 0x413   : > { %v2511_v8 = vpop.f32.mrf.mxu0 }
 0x414   : > { %2552 = vmatpush3.bf16.msra.mxu1 %v3381_v25 }
 0x415   : > { %v1823_v20 = vpop.f32.mrf.mxu0 }
 0x417   : > { %2514 = vmatmul.mubr.bf16.vlgmr.msra.gmra.mxu1 %v2747_v30  ;;  %v2512_v37 = vpop.f32.mrf.mxu0 }
 0x418   : > { %2517 = vmatprep.mubr.bf16.mxu1 %v2748_v26 }
 0x419   : > { %v1826_v40 = vpop.f32.mrf.mxu0 }
 0x41f   : > { %2518 = vmatmul.mubr.bf16.gmra.mxu1 %v2749_v27 }
 0x4b7   : > { %v2475_v0 = vpop.f32.mrf.mxu1 }
 0x4b8   : > { %v1816_v9 = vadd.f32 %v2507_v31, %v2475_v0 }
 0x4b9   : > { %v1614_v12 = vpop.f32.mrf.mxu1 }
 0x4ba   : > { %v1879_v13 = vadd.f32 %v3420_v2, %v1816_v9  ;;  %v1808_v16 = vadd.f32 %v1807_v15, %v1614_v12 }
 0x4bb   : > { %v2476_v17 = vpop.f32.mrf.mxu1 }
 0x4bc   : > { %1895 = vst [vmem:[#allocation14 + $0x10] sm:$0xff] %v1879_v13  ;;  %v1877_v21 = vadd.f32 %v3420_v2, %v1808_v16  ;;  %v1819_v24 = vadd.f32 %v2508_v34, %v2476_v17 }
 0x4bd   : > { %v1617_v25 = vpop.f32.mrf.mxu1 }
 0x4be   : > { %1893 = vst [vmem:[#allocation14] sm:$0xff] %v1877_v21  ;;  %v1880_v28 = vadd.f32 %v3420_v2, %v1819_v24  ;;  %v1811_v29 = vadd.f32 %v1810_v35, %v1617_v25 }
 0x4bf   : > { %v2479_v36 = vpop.f32.mrf.mxu1 }
 0x4c0   : > { %1896 = vst [vmem:[#allocation14 + $0x18] sm:$0xff] %v1880_v28  ;;  %v1878_v52 = vadd.f32 %v3420_v2, %v1811_v29  ;;  %v1832_v38 = vadd.f32 %v2511_v8, %v2479_v36 }
 0x4c1   : > { %v1630_v39 = vpop.f32.mrf.mxu1 }
 0x4c2   : > { %1894 = vst [vmem:[#allocation14 + $0x8] sm:$0xff] %v1878_v52  ;;  %v1883_v43 = vadd.f32 %v3420_v2, %v1832_v38  ;;  %v1824_v44 = vadd.f32 %v1823_v20, %v1630_v39 }
 0x4c3   : > { %v2480_v45 = vpop.f32.mrf.mxu1 }
 0x4c4   : > { %1899 = vst [vmem:[#allocation14 + $0x30] sm:$0xff] %v1883_v43  ;;  %v1881_v58 = vadd.f32 %v3420_v2, %v1824_v44  ;;  %v1835_v46 = vadd.f32 %v2512_v37, %v2480_v45 }
 0x4c5   : > { %v1633_v49 = vpop.f32.mrf.mxu1 }
 0x4c6   : > { %1897 = vst [vmem:[#allocation14 + $0x20] sm:$0xff] %v1881_v58  ;;  %v1884_v41 = vadd.f32 %v3420_v2, %v1835_v46  ;;  %v1827_v50 = vadd.f32 %v1826_v40, %v1633_v49 }
 0x4c7   : > { %v2483_v53 = vpop.f32.mrf.mxu1 }
 0x4c8   : > { %1900 = vst [vmem:[#allocation14 + $0x38] sm:$0xff] %v1884_v41  ;;  %v1882_v59 = vadd.f32 %v3420_v2, %v1827_v50 }
 0x4c9   : > { %v1646_v55 = vpop.f32.mrf.mxu1 }
 0x4ca   : > { %1898 = vst [vmem:[#allocation14 + $0x28] sm:$0xff] %v1882_v59 }
 0x4cb   : > { %v2484_v51 = vpop.f32.mrf.mxu1 }
 0x4cd   : > { %v1649_v54 = vpop.f32.mrf.mxu1 }
 0x4cf   : > { %v2487_v48 = vpop.f32.mrf.mxu1 }
 0x4d1   : > { %v1662_v57 = vpop.f32.mrf.mxu1 }
 0x4d3   : > { %v2488_v10 = vpop.f32.mrf.mxu1 }
 0x4d5   : > { %v1665_v42 = vpop.f32.mrf.mxu1 }
 0x4d7   : > { %v2515_v56 = vpop.f32.mrf.mxu1 }
 0x4d8   : > { %v1848_v4 = vadd.f32 %v2515_v56, %v2483_v53 }
 0x4d9   : > { %v1839_v6 = vpop.f32.mrf.mxu1 }
 0x4da   : > { %v1887_v63 = vadd.f32 %v3420_v2, %v1848_v4  ;;  %v1840_v60 = vadd.f32 %v1839_v6, %v1646_v55 }
 0x4db   : > { %v2516_v11 = vpop.f32.mrf.mxu1 }
 0x4dc   : > { %1903 = vst [vmem:[#allocation14 + $0x50] sm:$0xff] %v1887_v63  ;;  %v1885_v61 = vadd.f32 %v3420_v2, %v1840_v60  ;;  %v1851_v62 = vadd.f32 %v2516_v11, %v2484_v51 }
 0x4dd   : > { %v1842_v1 = vpop.f32.mrf.mxu1 }
 0x4de   : > { %1901 = vst [vmem:[#allocation14 + $0x40] sm:$0xff] %v1885_v61  ;;  %v1888_v5 = vadd.f32 %v3420_v2, %v1851_v62  ;;  %v1843_v3 = vadd.f32 %v1842_v1, %v1649_v54 }
 0x4df   : > { %v2519_v7 = vpop.f32.mrf.mxu1 }
 0x4e0   : > { %1904 = vst [vmem:[#allocation14 + $0x58] sm:$0xff] %v1888_v5  ;;  %v1886_v22 = vadd.f32 %v3420_v2, %v1843_v3  ;;  %v1864_v19 = vadd.f32 %v2519_v7, %v2487_v48 }
 0x4e1   : > { %v1855_v18 = vpop.f32.mrf.mxu1 }
 0x4e2   : > { %1902 = vst [vmem:[#allocation14 + $0x48] sm:$0xff] %v1886_v22  ;;  %v1891_v23 = vadd.f32 %v3420_v2, %v1864_v19  ;;  %v1856_v32 = vadd.f32 %v1855_v18, %v1662_v57 }
 0x4e3   : > { %v2520_v33 = vpop.f32.mrf.mxu1 }
 0x4e4   : > { %1907 = vst [vmem:[#allocation14 + $0x70] sm:$0xff] %v1891_v23  ;;  %v1889_v14 = vadd.f32 %v3420_v2, %v1856_v32  ;;  %v1867_v47 = vadd.f32 %v2520_v33, %v2488_v10 }
 0x4e5   : > { %v1858_v30 = vpop.f32.mrf.mxu1 }
 0x4e6   : > { %1905 = vst [vmem:[#allocation14 + $0x60] sm:$0xff] %v1889_v14  ;;  %v1892_v26 = vadd.f32 %v3420_v2, %v1867_v47  ;;  %v1859_v27 = vadd.f32 %v1858_v30, %v1665_v42 }
 0x4e8   : > { %1908 = vst [vmem:[#allocation14 + $0x78] sm:$0xff] %v1892_v26  ;;  %v1890_v31 = vadd.f32 %v3420_v2, %v1859_v27 }
 0x4ea   : > { %1906 = vst [vmem:[#allocation14 + $0x68] sm:$0xff] %v1890_v31 }
 0x4eb PF: > { %p3440_p5 = scmp.eq.s32.totalorder %s2050_s30, 1  ;;  %s2982_s19 = smov [#allocation14]  }
 0x4ec   : > { %s1924_s20 = sshll.u32 %s2982_s19, 4  ;;  %s1925_s20 = int_to_ptr.vmem [resolvable:$true] %s1924_s20 }
 0x4ed   : > { %s2906_s12 = scalar_lea.vmem %s1925_s20, 2048  ;;  %s2912_s13 = scalar_lea.vmem %s1925_s20, 4096 }
 0x4ee   : > { %p2907_p6 = scmp.ne.s32.totalorder %s1925_s20, %s2906_s12  ;;  %p2913_p12 = scmp.lt.s32.totalorder %s1925_s20, %s1925_s20 }
 0x4ef   : > { %p2914_p13 = scmp.lt.s32.totalorder %s2912_s13, %s2906_s12 }
 0x4f0   : > { %p2908_p10 = pnand %p2907_p6, %p3440_p5 }
 0x4f1   : > { %p2915_p0 = por %p2914_p13, %p2913_p12 }
 0x4f2   : > { %p2909_p11 = pneg %p2908_p10 }
 0x4f4   : > { %p2916_p1 = pnand %p2915_p0, %p2909_p11 }
 0x4f6   : > { %2919 = shalt.err (!%p2916_p1)
}
 0x4f7   : > { %s2983_s14 = smov 128   ;;  %s2984_s30 = smov 8  }
 0x4f8   : > { %2578 = dma.vmem_to_hbm [thread:$0]  (%p3440_p5), %s1925_s20, 2048, %s3471_s8, [#allocation5], %s2983_s14, %s2983_s14, %s2984_s30  }
 0x4f9 PF: > { %p2617_p4 = scmp.ge.s32.totalorder %s2972_s29, 2  ;;  %p2618_p7 = scmp.eq.s32.totalorder %s2051_s9, 1 }
 0x4fb   : > { %p2601_p8 = pnand %p2618_p7, %p2617_p4 }
 0x4fd   : > { %p2602_p9 = pneg %p2601_p8 }
 0x4ff   : > { %2959 = dma.done.wait (%p2602_p9), [#allocation5], 2048  }
 0x500   : > { %2961 = vsyncadd (%p2602_p9), [#allocation5], 4294965248  ;;  %s25_s29 = sadd.s32 1, %s2972_s29   ;;  %s3477_s27 = smov %s2968_s28 }
 0x501   : > { %p22_p2 = scmp.ge.s32.totalorder %s25_s29, 4   ;;  %s3478_s28 = smov %s3480_s26 }
 0x503   :  { %24 = sbr.rel (!%p22_p2) target bundleno = 7 (0x7), region = 121 }
 0x508   :  { %1945 = vsyncpa [#allocation4], 1 }
 0x509   :  { %1947 = vsyncpa [#allocation4 + $0x1], 1 }
 0x50a   :  { %1948 = vsyncpa [#allocation7], 1 }
 0x50b   :  { %1949 = vsyncpa [#allocation10], 1 }
 0x50c   :  { %1950 = vsyncpa [#allocation13], 1 }
 0x50d   :  { %1951 = vsyncpa [#allocation5], 1 }
 0x50e   :  { %1953 = vsyncpa [#allocation5 + $0x1], 1 }

</bundles_post_ra>
